<compile_context>
chip_gen: v5e
topology: v5e:2x2
jax: 0.10.0
libtpu: 0.0.40
codegen_flags: <defaults>
</compile_context>

<pallas_src>
import jax
import jax.numpy as jnp
from jax.experimental import pallas as pl
from jax.experimental.pallas import tpu as pltpu


def _round_up(n, m):
    return ((n + m - 1) // m) * m


def _critic_kernel(x_ref, w1_ref, b1_ref, w2_ref, b2_ref, o_ref):
    # Cast x f32 -> bf16 on the VPU (free: the kernel is DMA/launch bound).
    x = x_ref[...].astype(jnp.bfloat16)
    # fc1 + ReLU  (bf16 x bf16 -> f32 accumulate on the MXU)
    h = jnp.dot(x, w1_ref[...], preferred_element_type=jnp.float32)
    h = jnp.maximum(h + b1_ref[...], 0.0)          # [TB, hide] + [1, hide]
    # fc2 + ReLU
    y = jnp.dot(h.astype(jnp.bfloat16), w2_ref[...],
                preferred_element_type=jnp.float32)
    y = jnp.maximum(y + b2_ref[...], 0.0)          # [TB, out] + [1, out]
    o_ref[...] = y.astype(o_ref.dtype)             # store real columns only


def prepare_base_critic_params(w1, b1, w2, b2):
    """One-time parameter preparation (do NOT call per forward pass):
    casts weights to bf16 for the MXU and biases to f32 [1, N] rows."""
    return (w1.astype(jnp.bfloat16),
            b1.astype(jnp.float32).reshape(1, -1),
            w2.astype(jnp.bfloat16),
            b2.astype(jnp.float32).reshape(1, -1))


def base_critic_forward(x, params, *, block_batch=1024, gridless_max_rows=2048):
    """x: [B, in_size] (f32 or bf16); params from prepare_base_critic_params."""
    w1, b1, w2, b2 = params
    B, in_size = x.shape
    hide = w1.shape[1]
    out_size = w2.shape[1]
    out_dtype = x.dtype

    if B <= gridless_max_rows:
        # Gridless path: single full block resident in VMEM, no pipeline
        # prologue/epilogue.  (At truly tiny shapes the pallas_call launch
        # itself dominates; fuse with the caller if that matters.)
        return pl.pallas_call(
            _critic_kernel,
            out_shape=jax.ShapeDtypeStruct((B, out_size), out_dtype),
            in_specs=[pl.BlockSpec(memory_space=pltpu.MemorySpace.VMEM)] * 5,
            out_specs=pl.BlockSpec(memory_space=pltpu.MemorySpace.VMEM),
        )(x, w1, b1, w2, b2)

    # Batch-tiled path: weights/biases stay resident (constant index_map);
    # only x / out tiles stream through VMEM.  Even tile count so the
    # "parallel" batch axis splits evenly across v7x's two TensorCores.
    n_tiles = max(2, 2 * pl.cdiv(B, 2 * block_batch))
    TB = _round_up(pl.cdiv(B, n_tiles), 8)
    grid = (pl.cdiv(B, TB),)     # final partial tile: OOB writes are masked
    return pl.pallas_call(
        _critic_kernel,
        out_shape=jax.ShapeDtypeStruct((B, out_size), out_dtype),
        grid=grid,
        in_specs=[
            pl.BlockSpec((TB, in_size), lambda i: (i, 0)),
            pl.BlockSpec((in_size, hide), lambda i: (0, 0)),
            pl.BlockSpec((1, hide), lambda i: (0, 0)),
            pl.BlockSpec((hide, out_size), lambda i: (0, 0)),
            pl.BlockSpec((1, out_size), lambda i: (0, 0)),
        ],
        out_specs=pl.BlockSpec((TB, out_size), lambda i: (i, 0)),
        compiler_params=pltpu.CompilerParams(
            dimension_semantics=("parallel",)),   # v7x: 2 TCs split the batch
    )(x, w1, b1, w2, b2)


def init_base_critic_params(key, in_size, hide_size_fc, out_size,
                            dtype=jnp.float32):
    """Deterministic init mirroring torch.nn.Linear defaults
    (uniform in +-1/sqrt(fan_in)). Weights stored transposed: [in, out]."""
    k1, k2, k3, k4 = jax.random.split(key, 4)
    bound1 = 1.0 / jnp.sqrt(in_size)
    bound2 = 1.0 / jnp.sqrt(hide_size_fc)
    w1 = jax.random.uniform(k1, (in_size, hide_size_fc), dtype,
                            minval=-bound1, maxval=bound1)
    b1 = jax.random.uniform(k2, (hide_size_fc,), dtype,
                            minval=-bound1, maxval=bound1)
    w2 = jax.random.uniform(k3, (hide_size_fc, out_size), dtype,
                            minval=-bound2, maxval=bound2)
    b2 = jax.random.uniform(k4, (out_size,), dtype,
                            minval=-bound2, maxval=bound2)
    return w1, b1, w2, b2


if __name__ == "__main__":
    # Small shapes implied by the forward: x is [batch, in_size].
    batch, in_size, hide_size_fc, out_size = 8, 32, 64, 16

    key = jax.random.PRNGKey(0)
    kx, kp = jax.random.split(key)
    x = jax.random.normal(kx, (batch, in_size), dtype=jnp.float32)
    w1, b1, w2, b2 = init_base_critic_params(kp, in_size, hide_size_fc, out_size)

    # One-time parameter prep (cast/reshape), hoisted out of the forward.
    params = prepare_base_critic_params(w1, b1, w2, b2)

    fwd = jax.jit(base_critic_forward)

    def ref_fn(xx):
        return jnp.maximum(jnp.maximum(xx @ w1 + b1, 0.0) @ w2 + b2, 0.0)

    # Small batch -> gridless single-block path.
    out = jax.block_until_ready(fwd(x, params))
    ref = ref_fn(x)
    assert out.shape == (batch, out_size)
    assert jnp.allclose(out, ref, atol=3e-2, rtol=3e-2)  # bf16 MXU tolerance

    # Larger batch (non-multiple of the tile) -> batch-tiled grid path with
    # resident weights and a masked partial final tile.
    xb = jax.random.normal(kx, (4100, in_size), dtype=jnp.float32)
    outb = jax.block_until_ready(fwd(xb, params))
    refb = ref_fn(xb)
    assert outb.shape == (4100, out_size)
    assert jnp.allclose(outb, refb, atol=3e-2, rtol=3e-2)

    print("KERNEL_OK")
</pallas_src>

<mosaic_0001>
module attributes {stable_mosaic.version = 11 : i64} {
  func.func @_critic_kernel(%arg0: memref<8x32xf32, #tpu.memory_space<vmem>>, %arg1: memref<32x64xbf16, #tpu.memory_space<vmem>>, %arg2: memref<1x64xf32, #tpu.memory_space<vmem>>, %arg3: memref<64x16xbf16, #tpu.memory_space<vmem>>, %arg4: memref<1x16xf32, #tpu.memory_space<vmem>>, %arg5: memref<8x16xf32, #tpu.memory_space<vmem>>) attributes {dimension_semantics = [], scalar_prefetch = 0 : i64, scratch_operands = 0 : i64, tpu.core_type = #tpu.core_type<tc>} {
    %c0 = arith.constant 0 : index
    %c0_0 = arith.constant 0 : index
    %0 = vector.load %arg0[%c0, %c0_0] : memref<8x32xf32, #tpu.memory_space<vmem>>, vector<8x32xf32>
    %1 = arith.truncf %0 : vector<8x32xf32> to vector<8x32xbf16>
    %c0_1 = arith.constant 0 : index
    %c0_2 = arith.constant 0 : index
    %2 = vector.load %arg1[%c0_1, %c0_2] : memref<32x64xbf16, #tpu.memory_space<vmem>>, vector<32x64xbf16>
    %cst = arith.constant dense<0.000000e+00> : vector<8x64xf32>
    %3 = tpu.matmul %1, %2, %cst {dimension_numbers = #tpu.dot_dimension_numbers<[1], [0], [0], [1], [0, 0, 1, 1], [], []>} : vector<8x32xbf16>, vector<32x64xbf16>, vector<8x64xf32> -> vector<8x64xf32>
    %c0_3 = arith.constant 0 : index
    %c0_4 = arith.constant 0 : index
    %4 = vector.load %arg2[%c0_3, %c0_4] : memref<1x64xf32, #tpu.memory_space<vmem>>, vector<1x64xf32>
    %5 = vector.broadcast %4 : vector<1x64xf32> to vector<8x64xf32>
    %6 = arith.addf %3, %5 : vector<8x64xf32>
    %cst_5 = arith.constant 0.000000e+00 : f32
    %7 = vector.broadcast %cst_5 : f32 to vector<8x64xf32>
    %8 = arith.maximumf %6, %7 : vector<8x64xf32>
    %9 = arith.truncf %8 : vector<8x64xf32> to vector<8x64xbf16>
    %c0_6 = arith.constant 0 : index
    %c0_7 = arith.constant 0 : index
    %10 = vector.load %arg3[%c0_6, %c0_7] : memref<64x16xbf16, #tpu.memory_space<vmem>>, vector<64x16xbf16>
    %cst_8 = arith.constant dense<0.000000e+00> : vector<8x16xf32>
    %11 = tpu.matmul %9, %10, %cst_8 {dimension_numbers = #tpu.dot_dimension_numbers<[1], [0], [0], [1], [0, 0, 1, 1], [], []>} : vector<8x64xbf16>, vector<64x16xbf16>, vector<8x16xf32> -> vector<8x16xf32>
    %c0_9 = arith.constant 0 : index
    %c0_10 = arith.constant 0 : index
    %12 = vector.load %arg4[%c0_9, %c0_10] : memref<1x16xf32, #tpu.memory_space<vmem>>, vector<1x16xf32>
    %13 = vector.broadcast %12 : vector<1x16xf32> to vector<8x16xf32>
    %14 = arith.addf %11, %13 : vector<8x16xf32>
    %cst_11 = arith.constant 0.000000e+00 : f32
    %15 = vector.broadcast %cst_11 : f32 to vector<8x16xf32>
    %16 = arith.maximumf %14, %15 : vector<8x16xf32>
    %c0_12 = arith.constant 0 : index
    %c0_13 = arith.constant 0 : index
    %17 = vector.load %arg5[%c0_12, %c0_13] : memref<8x16xf32, #tpu.memory_space<vmem>>, vector<8x16xf32>
    tpu.vector_store %arg5[%c0_12, %c0_13], %16 {strides = array<i32>} : memref<8x16xf32, #tpu.memory_space<vmem>>, vector<8x16xf32>,
    return
  }
}

</mosaic_0001>

<bundles_post_ra>
// kernel: base_critic_forward.1
= control target key start
LH: loop header
LB: loop body
LE: loop exit
PB: predicated region body
PF: predicated region fallthrough
CT: control target
= control target key end

     0   :  { %s257_s0 = inlined_call_operand.vmem [shape: f32[8,32], index: 0, kind: input, shape index: {}]   ;;  %s258_s1 = inlined_call_operand.vmem [shape: bf16[32,64], index: 1, kind: input, shape index: {}]   ;;  %s259_s2 = inlined_call_operand.vmem [shape: f32[1,64], index: 2, kind: input, shape index: {}]   ;;  %s260_s3 = inlined_call_operand.vmem [shape: bf16[64,16], index: 3, kind: input, shape index: {}]   ;;  %s261_s4 = inlined_call_operand.vmem [shape: f32[1,16], index: 4, kind: input, shape index: {}]   ;;  %s262_s5 = inlined_call_operand.hbm [shape: f32[8,16], index: 5, kind: output, shape index: {}]  }
   0x1   :  { %v162_v0 = vld [vmem:[%s258_s1 + $0x8] sm:$0xff]  ;;  %v161_v1 = vld [vmem:[%s258_s1] sm:$0xff]  ;;  %v166_v2 = vld [vmem:[%s260_s3 + $0x18] sm:$0xff] }
   0x2   :  { %54 = vmatpush.bf16.msra.mxu0 %v162_v0  ;;  %v22_v3 = vld [vmem:[%s257_s0] sm:$0xff] }
   0x3   :  { %10 = vsyncpa [#allocation3], 0  ;;  %107 = vmatpush.bf16.msra.mxu1 %v166_v2  ;;  %v165_v4 = vld [vmem:[%s260_s3 + $0x10] sm:$0xff]  ;;  %v23_v5 = vpack.c.bf16 %v22_v3, %v22_v3  ;;  %vm44_vm0 = vcmask 261120   ;;  %v164_v6 = vld [vmem:[%s260_s3 + $0x8] sm:$0xff]  ;;  %vm99_vm1 = vcmask 523264  }
   0x4   :  { %v163_v7 = vld [vmem:[%s260_s3] sm:$0xff]  ;;  %s196_s9 = smov [#allocation2]   ;;  %s126_s12 = sshll.u32 %s262_s5, 4  ;;  %vm117_vm2 = vcmask 130048   ;;  %s127_s12 = int_to_ptr.hbm [resolvable:$true] %s126_s12 }
   0x5   :  { %v168_v8 = vld [vmem:[%s259_s2] ss:$0 sm:$0xff]  ;;  %s124_s10 = sshll.u32 %s196_s9, 4  ;;  %s125_s10 = int_to_ptr.vmem [resolvable:$true] %s124_s10 }
   0x6   :  { %55 = vmatpush.bf16.msra.mxu0 %v161_v1  ;;  %v169_v14 = vld [vmem:[%s261_s4] ss:$0 sm:$0xff] }
   0x7   :  { %108 = vmatpush.bf16.msra.mxu1 %v165_v4 }
   0x9   :  { %143 = vmatmul.msk.bf16.vlgmr.msra.gmra.mxu0 %vm44_vm0, %v23_v5 }
   0xb   :  { %109 = vmatpush.bf16.msra.mxu1 %v164_v6 }
   0xf   :  { %110 = vmatpush.bf16.msra.mxu1 %v163_v7 }
  0x86   :  { %v57_v9 = vpop.f32.mrf.mxu0 }
  0x87   :  { %v58_v10 = vadd.f32 %v168_v8, %v57_v9 }
  0x89   :  { %v61_v11 = vmax.f32 %v58_v10, 0.0 }
  0x8b   :  { %v62_v12 = vpack.c.bf16 %v61_v11, %v61_v11 }
  0x8d   :  { %160 = vmatmul.msk.bf16.vlgmr.msra.gmra.mxu1 %vm99_vm1, %v62_v12 }
  0x8e   :  { %v59_v13 = vpop.f32.mrf.mxu0 }
 0x10a   :  { %v112_v15 = vpop.f32.mrf.mxu1 }
 0x10b   :  { %v113_v16 = vadd.f32 %v169_v14, %v112_v15 }
 0x10d   :  { %v116_v17 = vmax.f32 %v113_v16, 0.0 }
 0x10f   :  { %118 = vst.msk [vmem:[#allocation2] sm:$0xff] %vm117_vm2, %v116_v17 }
 0x110   :  { %129 = dma.vmem_to_hbm [thread:$0]  %s125_s10, 128, %s127_s12, [#allocation3]  }
 0x112   :  { %v114_v18 = vpop.f32.mrf.mxu1 }
 0x113   :  { %194 = dma.done.wait [#allocation3], 128  }
 0x114   :  { %195 = vsyncadd [#allocation3], 4294967168 }
 0x115   :  { %134 = vsyncpa [#allocation3], 1 }

</bundles_post_ra>
